<compile_context>
chip_gen: v7x
topology: tpu7x:2x2x1
jax: 0.10.0
libtpu: 0.0.40
codegen_flags: <defaults>
</compile_context>

<pallas_src>
import functools
import math

import jax
import jax.numpy as jnp
from jax import lax
from jax.experimental import pallas as pl
from jax.experimental.pallas import tpu as pltpu

_EPS = 1e-5
_LANE = 128
_SUBLANE = 8
_ROW_OFF = 8  # image rows live at [8, 8+H) in the padded scratch (aligned)


# ---------------------------------------------------------------------------
# Wrapper-side weight / constant preparation (plain JAX, outside the kernels)
# ---------------------------------------------------------------------------
def _banded_weights(w_hwio, w_img, dtype):
    """(3,3,Ci,Co) conv weights -> (3, W*Ci, W*Co) row-banded matrices.

    wb[kh][p*Ci + i, j*Co + o] = w[kh, kw, i, o] with p = j + kw - 1 (zero
    outside the band).  Horizontal zero padding / edge truncation is folded
    into the band, so the kernel only needs vertically padded activations.
    """
    kk = jnp.arange(3)[:, None, None]
    pp = jnp.arange(w_img)[None, :, None]
    jj = jnp.arange(w_img)[None, None, :]
    band = (pp == jj + kk - 1).astype(jnp.float32)               # (3, W, W)
    wb = jnp.einsum("kpj,hkio->hpijo", band, w_hwio.astype(jnp.float32))
    c_i, c_o = w_hwio.shape[2], w_hwio.shape[3]
    return wb.reshape(3, w_img * c_i, w_img * c_o).astype(dtype)


def _pool_matrix(w_img, c, dtype=jnp.float32):
    """(W*C, W*C) 0/1 matrix: pools per-(position,channel) sums over the W
    positions of each channel and broadcasts the per-channel total back."""
    wc = w_img * c
    a = jnp.arange(wc)[:, None] % c
    b = jnp.arange(wc)[None, :] % c
    return (a == b).astype(dtype)


def _tile_vec(v, w_img, c):
    """(1, C) per-channel vector -> (1, W*C) tiled to the rows layout."""
    return jnp.tile(v.reshape(c).astype(jnp.float32), (w_img,)).reshape(1, w_img * c)


def _bn_scale_shift(ps, pq, gamma, beta, w_img, c, m_total):
    """Finalize BN scale/shift from raw per-program partial sums (tiny XLA)."""
    sum_c = jnp.sum(ps, axis=(0, 1)).reshape(w_img, c).sum(axis=0)
    ssq_c = jnp.sum(pq, axis=(0, 1)).reshape(w_img, c).sum(axis=0)
    mean = sum_c / m_total
    var = jnp.maximum(ssq_c / m_total - mean * mean, 0.0)
    scale = gamma.reshape(c) * lax.rsqrt(var + _EPS)
    shift = beta.reshape(c) - mean * scale
    return _tile_vec(scale, w_img, c), _tile_vec(shift, w_img, c)


# ---------------------------------------------------------------------------
# VMEM budgeting helpers
# ---------------------------------------------------------------------------
def _padded_bytes(shape, itemsize=4):
    shape = tuple(int(s) for s in shape)
    if len(shape) < 2:
        shape = (1,) * (2 - len(shape)) + shape
    lead = math.prod(shape[:-2])
    sub = -(-shape[-2] // _SUBLANE) * _SUBLANE
    lane = -(-shape[-1] // _LANE) * _LANE
    return lead * sub * lane * itemsize


def _vmem_estimate(block_shapes, scratch_shapes):
    total = sum(2 * _padded_bytes(s) for s in block_shapes)  # double-buffered
    total += sum(_padded_bytes(s) for s in scratch_shapes)
    return total


def _compiler_params(est_bytes, semantics):
    limit = int(min(64 << 20, max(32 << 20, 2 * est_bytes)))
    return pltpu.CompilerParams(dimension_semantics=semantics,
                                vmem_limit_bytes=limit)


def _pick_batch_tile(n, per_image_bytes, budget):
    best = 1
    for d in range(1, n + 1):
        if n % d or d * per_image_bytes > budget:
            continue
        if d == n and n > 1:
            continue  # keep >= 2 grid steps so both v7x TensorCores get work
        best = d
    return best


# ---------------------------------------------------------------------------
# In-kernel helpers
# ---------------------------------------------------------------------------
def _conv3x3_rows(vp_ref, wb_ref, img_rows, *, h, mxu_dtype, zero_borders=True):
    """3x3 / stride-1 conv as three row-slab matmuls with banded weights.

    vp_ref:   (bt, h+16, W*Ci) VMEM scratch; rows [0,8) and [h+8, h+16) are
              zero borders, rows [8, 8+h) get `img_rows` (sublane-aligned).
    wb_ref:   (3, W*Ci, W*Co) resident banded weights.
    img_rows: (bt, h, W*Ci) activations.
    Returns   (bt*h, W*Co) float32.
    """
    bt = vp_ref.shape[0]
    wc_in = vp_ref.shape[2]
    if zero_borders:
        z = jnp.zeros((bt, _ROW_OFF, wc_in), vp_ref.dtype)
        vp_ref[:, 0:_ROW_OFF, :] = z
        vp_ref[:, h + _ROW_OFF:h + 2 * _ROW_OFF, :] = z
    vp_ref[:, _ROW_OFF:_ROW_OFF + h, :] = img_rows

    acc = None
    for kh in range(3):
        r0 = _ROW_OFF - 1 + kh
        slab = vp_ref[:, r0:r0 + h, :].reshape(bt * h, wc_in).astype(mxu_dtype)
        part = jnp.dot(slab, wb_ref[kh], preferred_element_type=jnp.float32)
        acc = part if acc is None else acc + part
    return acc


# ---------------------------------------------------------------------------
# Kernels
# ---------------------------------------------------------------------------
def _fused_block_kernel(x_ref, wb1_ref, wb2_ref, g1_ref, b1_ref, g2_ref,
                        b2_ref, pool_ref, o_ref, vp_ref, *, h, inv_m,
                        mxu_dtype):
    """Whole BasicBlock on a fully VMEM-resident problem (single grid step)."""
    bt, _, wc = x_ref.shape
    rows = bt * h

    x_rows = x_ref[...]                                        # (bt, h, wc)
    y1 = _conv3x3_rows(vp_ref, wb1_ref, x_rows, h=h, mxu_dtype=mxu_dtype)

    # bn1 with global batch statistics (pool over rows, then over the W
    # positions of each channel via the 0/1 pooling matrix), then ReLU.
    s1 = jnp.dot(jnp.sum(y1, axis=0, keepdims=True), pool_ref[...],
                 preferred_element_type=jnp.float32)
    q1 = jnp.dot(jnp.sum(y1 * y1, axis=0, keepdims=True), pool_ref[...],
                 preferred_element_type=jnp.float32)
    mean1 = s1 * inv_m
    var1 = jnp.maximum(q1 * inv_m - mean1 * mean1, 0.0)
    scale1 = g1_ref[...] * lax.rsqrt(var1 + _EPS)
    shift1 = b1_ref[...] - mean1 * scale1
    h1 = jnp.maximum(y1 * scale1 + shift1, 0.0)

    # conv2 (borders of the scratch are still zero from conv1).
    y2 = _conv3x3_rows(vp_ref, wb2_ref, h1.reshape(bt, h, wc), h=h,
                       mxu_dtype=mxu_dtype, zero_borders=False)

    s2 = jnp.dot(jnp.sum(y2, axis=0, keepdims=True), pool_ref[...],
                 preferred_element_type=jnp.float32)
    q2 = jnp.dot(jnp.sum(y2 * y2, axis=0, keepdims=True), pool_ref[...],
                 preferred_element_type=jnp.float32)
    mean2 = s2 * inv_m
    var2 = jnp.maximum(q2 * inv_m - mean2 * mean2, 0.0)
    scale2 = g2_ref[...] * lax.rsqrt(var2 + _EPS)
    shift2 = b2_ref[...] - mean2 * scale2

    res = x_rows.reshape(rows, wc)
    out = jnp.maximum(y2 * scale2 + shift2 + res, 0.0)
    o_ref[...] = out.reshape(bt, h, wc)


def _conv1_stats_kernel(x_ref, wb1_ref, y1_ref, ps_ref, pq_ref, vp_ref,
                        *, h, mxu_dtype):
    """conv1 on one batch tile + raw per-(position,channel) partial sums."""
    bt, _, wc = x_ref.shape
    y1 = _conv3x3_rows(vp_ref, wb1_ref, x_ref[...], h=h, mxu_dtype=mxu_dtype)
    y1_ref[...] = y1.reshape(bt, h, wc)
    ps_ref[...] = jnp.sum(y1, axis=0, keepdims=True).reshape(1, 1, wc)
    pq_ref[...] = jnp.sum(y1 * y1, axis=0, keepdims=True).reshape(1, 1, wc)


def _bn1_relu_conv2_stats_kernel(y1_ref, sc1_ref, sh1_ref, wb2_ref, y2_ref,
                                 ps_ref, pq_ref, vp_ref, *, h, mxu_dtype):
    """bn1-apply (precomputed scale/shift) + ReLU + conv2 + stage-2 partials."""
    bt, _, wc = y1_ref.shape
    y1 = y1_ref[...].reshape(bt * h, wc)
    h1 = jnp.maximum(y1 * sc1_ref[...] + sh1_ref[...], 0.0)
    y2 = _conv3x3_rows(vp_ref, wb2_ref, h1.reshape(bt, h, wc), h=h,
                       mxu_dtype=mxu_dtype)
    y2_ref[...] = y2.reshape(bt, h, wc)
    ps_ref[...] = jnp.sum(y2, axis=0, keepdims=True).reshape(1, 1, wc)
    pq_ref[...] = jnp.sum(y2 * y2, axis=0, keepdims=True).reshape(1, 1, wc)


def _bn2_residual_relu_kernel(y2_ref, sc2_ref, sh2_ref, x_ref, o_ref):
    """bn2-apply (precomputed scale/shift) + identity shortcut + ReLU."""
    o_ref[...] = jnp.maximum(
        y2_ref[...] * sc2_ref[...] + sh2_ref[...] + x_ref[...], 0.0)


# ---------------------------------------------------------------------------
# pallas_call wrappers
# ---------------------------------------------------------------------------
def _fused_call(x_rows, wb1, wb2, params, *, n, h, w, c, mxu_dtype, est):
    wc = w * c
    g1 = _tile_vec(params["g1"], w, c)
    b1 = _tile_vec(params["b1"], w, c)
    g2 = _tile_vec(params["g2"], w, c)
    b2 = _tile_vec(params["b2"], w, c)
    pool = _pool_matrix(w, c)

    kernel = functools.partial(_fused_block_kernel, h=h,
                               inv_m=1.0 / (n * h * w), mxu_dtype=mxu_dtype)
    row_spec = pl.BlockSpec((n, h, wc), lambda i: (0, 0, 0))
    wb_spec = pl.BlockSpec((3, wc, wc), lambda i: (0, 0, 0))
    vec_spec = pl.BlockSpec((1, wc), lambda i: (0, 0))
    pool_spec = pl.BlockSpec((wc, wc), lambda i: (0, 0))

    return pl.pallas_call(
        kernel,
        out_shape=jax.ShapeDtypeStruct((n, h, wc), jnp.float32),
        grid_spec=pltpu.PrefetchScalarGridSpec(
            num_scalar_prefetch=0,
            grid=(1,),
            in_specs=[row_spec, wb_spec, wb_spec, vec_spec, vec_spec,
                      vec_spec, vec_spec, pool_spec],
            out_specs=row_spec,
            scratch_shapes=[
                pltpu.VMEM((n, h + 2 * _ROW_OFF, wc), jnp.float32)],
        ),
        compiler_params=_compiler_params(est, ("arbitrary",)),
    )(x_rows, wb1, wb2, g1, b1, g2, b2, pool)


def _tiled_forward(x_rows, wb1, wb2, params, *, n, h, w, c, mxu_dtype,
                   batch_tile, tile_vmem_budget):
    wc = w * c
    m_total = n * h * w

    per_img = _vmem_estimate([(1, h, wc), (1, h, wc)],
                             [(1, h + 2 * _ROW_OFF, wc)])
    if batch_tile is None:
        batch_tile = _pick_batch_tile(n, per_img, tile_vmem_budget)
    bt = batch_tile
    assert n % bt == 0, "batch_tile must divide the batch size"
    steps = n // bt

    blk = pl.BlockSpec((bt, h, wc), lambda i: (i, 0, 0))
    wb_spec = pl.BlockSpec((3, wc, wc), lambda i: (0, 0, 0))
    vec_spec = pl.BlockSpec((1, wc), lambda i: (0, 0))
    stat_blk = pl.BlockSpec((1, 1, wc), lambda i: (i, 0, 0))
    act_shape = jax.ShapeDtypeStruct((n, h, wc), jnp.float32)
    stat_shape = jax.ShapeDtypeStruct((steps, 1, wc), jnp.float32)
    vp_scratch = pltpu.VMEM((bt, h + 2 * _ROW_OFF, wc), jnp.float32)

    est = _vmem_estimate([(bt, h, wc)] * 2 + [(3, wc, wc), (1, 1, wc),
                                              (1, 1, wc)],
                         [(bt, h + 2 * _ROW_OFF, wc)])
    cp = _compiler_params(est, ("parallel",))

    # Stage 1: conv1 per batch tile + per-program partial BN1 statistics.
    y1, ps1, pq1 = pl.pallas_call(
        functools.partial(_conv1_stats_kernel, h=h, mxu_dtype=mxu_dtype),
        out_shape=(act_shape, stat_shape, stat_shape),
        grid_spec=pltpu.PrefetchScalarGridSpec(
            num_scalar_prefetch=0, grid=(steps,),
            in_specs=[blk, wb_spec],
            out_specs=(blk, stat_blk, stat_blk),
            scratch_shapes=[vp_scratch]),
        compiler_params=cp,
    )(x_rows, wb1)

    # Finalize BN1 coefficients from the global batch stats (tiny XLA step,
    # pairwise reduce over per-program partials).
    sc1, sh1 = _bn_scale_shift(ps1, pq1, params["g1"], params["b1"], w, c,
                               m_total)

    # Stage 2: bn1-apply + ReLU + in-VMEM re-pad + conv2 + partial BN2 stats.
    y2, ps2, pq2 = pl.pallas_call(
        functools.partial(_bn1_relu_conv2_stats_kernel, h=h,
                          mxu_dtype=mxu_dtype),
        out_shape=(act_shape, stat_shape, stat_shape),
        grid_spec=pltpu.PrefetchScalarGridSpec(
            num_scalar_prefetch=0, grid=(steps,),
            in_specs=[blk, vec_spec, vec_spec, wb_spec],
            out_specs=(blk, stat_blk, stat_blk),
            scratch_shapes=[vp_scratch]),
        compiler_params=cp,
    )(y1, sc1, sh1, wb2)

    sc2, sh2 = _bn_scale_shift(ps2, pq2, params["g2"], params["b2"], w, c,
                               m_total)

    # Stage 3: bn2-apply + identity residual + ReLU (pure epilogue).
    return pl.pallas_call(
        _bn2_residual_relu_kernel,
        out_shape=act_shape,
        grid_spec=pltpu.PrefetchScalarGridSpec(
            num_scalar_prefetch=0, grid=(steps,),
            in_specs=[blk, vec_spec, vec_spec, blk],
            out_specs=blk,
            scratch_shapes=[]),
        compiler_params=cp,
    )(y2, sc2, sh2, x_rows)


def basic_block_forward(x_nchw, params, *, batch_tile=None,
                        mxu_dtype=jnp.float32, force_tiled=False,
                        fused_vmem_budget=40 << 20,
                        tile_vmem_budget=12 << 20):
    """BasicBlock.forward (stride=1, identity shortcut). x_nchw: (N,C,H,W)."""
    n, c, h, w = x_nchw.shape
    assert params["w1"].shape[-1] == c, \
        "identity-shortcut case only (in_planes == planes)"
    wc = w * c

    # Lane-dense "rows" layout: (N, H, W*C), minor dim W*C.
    x_rows = jnp.transpose(x_nchw, (0, 2, 3, 1)).astype(jnp.float32)
    x_rows = x_rows.reshape(n, h, wc)

    wb1 = _banded_weights(params["w1"], w, mxu_dtype)
    wb2 = _banded_weights(params["w2"], w, mxu_dtype)

    fused_est = _vmem_estimate(
        [(n, h, wc), (3, wc, wc), (3, wc, wc), (wc, wc)] + [(1, wc)] * 4
        + [(n, h, wc)],
        [(n, h + 2 * _ROW_OFF, wc)])

    if not force_tiled and fused_est <= fused_vmem_budget:
        out_rows = _fused_call(x_rows, wb1, wb2, params, n=n, h=h, w=w, c=c,
                               mxu_dtype=mxu_dtype, est=fused_est)
    else:
        out_rows = _tiled_forward(x_rows, wb1, wb2, params, n=n, h=h, w=w,
                                  c=c, mxu_dtype=mxu_dtype,
                                  batch_tile=batch_tile,
                                  tile_vmem_budget=tile_vmem_budget)

    return jnp.transpose(out_rows.reshape(n, h, w, c), (0, 3, 1, 2))


# ---------------------------------------------------------------------------
# Reference + parameters
# ---------------------------------------------------------------------------
def _reference_forward(x_nchw, params):
    """Plain-JAX reference for correctness checking."""
    def conv(x, w_hwio):
        w_oihw = jnp.transpose(w_hwio, (3, 2, 0, 1))
        return lax.conv_general_dilated(
            x, w_oihw, (1, 1), ((1, 1), (1, 1)),
            dimension_numbers=("NCHW", "OIHW", "NCHW"),
            precision=lax.Precision.HIGHEST)

    def bn(x, g, b):
        mean = jnp.mean(x, axis=(0, 2, 3), keepdims=True)
        var = jnp.mean((x - mean) ** 2, axis=(0, 2, 3), keepdims=True)
        xh = (x - mean) * lax.rsqrt(var + _EPS)
        return xh * g.reshape(1, -1, 1, 1) + b.reshape(1, -1, 1, 1)

    h = jax.nn.relu(bn(conv(x_nchw, params["w1"]), params["g1"], params["b1"]))
    o = bn(conv(h, params["w2"]), params["g2"], params["b2"]) + x_nchw
    return jax.nn.relu(o)


def init_params(key, in_planes, planes):
    """Deterministic synthetic parameters; conv weights as (3,3,Cin,Cout)."""
    k1, k2 = jax.random.split(key)
    w1 = 0.1 * jax.random.normal(k1, (3, 3, in_planes, planes), jnp.float32)
    w2 = 0.1 * jax.random.normal(k2, (3, 3, planes, planes), jnp.float32)
    g1 = (1.0 + 0.1 * jnp.arange(planes, dtype=jnp.float32)).reshape(1, planes)
    b1 = (0.05 * jnp.arange(planes, dtype=jnp.float32)).reshape(1, planes)
    g2 = (1.0 - 0.05 * jnp.arange(planes, dtype=jnp.float32)).reshape(1, planes)
    b2 = (-0.02 * jnp.arange(planes, dtype=jnp.float32)).reshape(1, planes)
    return {"w1": w1, "g1": g1, "b1": b1, "w2": w2, "g2": g2, "b2": b2}


if __name__ == "__main__":
    key = jax.random.PRNGKey(0)
    kx, kp, kx2 = jax.random.split(key, 3)

    # Spec-sized case (N=2, C=4, 16x16): fully fused single-kernel fast path.
    N, C, H, W = 2, 4, 16, 16
    x = jax.random.normal(kx, (N, C, H, W), jnp.float32)
    params = init_params(kp, C, C)

    out = jax.block_until_ready(basic_block_forward(x, params))
    ref = jax.block_until_ready(_reference_forward(x, params))
    assert out.shape == (N, C, H, W)
    err = float(jnp.max(jnp.abs(out - ref)))
    assert err < 2e-3, f"fused path mismatch vs reference: {err}"

    # Larger batch: exercises the tiled / parallel (megacore) 3-kernel path.
    N2 = 8
    x2 = jax.random.normal(kx2, (N2, C, H, W), jnp.float32)
    out2 = jax.block_until_ready(
        basic_block_forward(x2, params, force_tiled=True, batch_tile=4))
    ref2 = jax.block_until_ready(_reference_forward(x2, params))
    err2 = float(jnp.max(jnp.abs(out2 - ref2)))
    assert err2 < 2e-3, f"tiled path mismatch vs reference: {err2}"

    # bf16 MXU operands (v6e/v7x): conv matmuls in bf16, BN math stays f32.
    out3 = jax.block_until_ready(
        basic_block_forward(x, params, mxu_dtype=jnp.bfloat16))
    err3 = float(jnp.max(jnp.abs(out3 - ref)))
    assert err3 < 1e-1, f"bf16 MXU path mismatch vs reference: {err3}"

    print("KERNEL_OK")
</pallas_src>

<mosaic_0001>
module attributes {stable_mosaic.version = 11 : i64} {
  func.func @_fused_block_kernel(%arg0: i32, %arg1: memref<2x16x64xf32, #tpu.memory_space<vmem>>, %arg2: memref<3x64x64xf32, #tpu.memory_space<vmem>>, %arg3: memref<3x64x64xf32, #tpu.memory_space<vmem>>, %arg4: memref<1x64xf32, #tpu.memory_space<vmem>>, %arg5: memref<1x64xf32, #tpu.memory_space<vmem>>, %arg6: memref<1x64xf32, #tpu.memory_space<vmem>>, %arg7: memref<1x64xf32, #tpu.memory_space<vmem>>, %arg8: memref<64x64xf32, #tpu.memory_space<vmem>>, %arg9: memref<2x16x64xf32, #tpu.memory_space<vmem>>, %arg10: memref<2x32x64xf32, #tpu.memory_space<vmem>>) attributes {dimension_semantics = [#tpu.dimension_semantics<arbitrary>], iteration_bounds = array<i64: 1>, scalar_prefetch = 0 : i64, scratch_operands = 1 : i64, tpu.core_type = #tpu.core_type<tc>, window_params = [{pipeline_mode = #tpu.pipeline_mode<synchronous>, transform_indices = @transform_0, window_bounds = array<i64: 2, 16, 64>}, {pipeline_mode = #tpu.pipeline_mode<synchronous>, transform_indices = @transform_1, window_bounds = array<i64: 3, 64, 64>}, {pipeline_mode = #tpu.pipeline_mode<synchronous>, transform_indices = @transform_2, window_bounds = array<i64: 3, 64, 64>}, {pipeline_mode = #tpu.pipeline_mode<synchronous>, transform_indices = @transform_3, window_bounds = array<i64: 1, 64>}, {pipeline_mode = #tpu.pipeline_mode<synchronous>, transform_indices = @transform_4, window_bounds = array<i64: 1, 64>}, {pipeline_mode = #tpu.pipeline_mode<synchronous>, transform_indices = @transform_5, window_bounds = array<i64: 1, 64>}, {pipeline_mode = #tpu.pipeline_mode<synchronous>, transform_indices = @transform_6, window_bounds = array<i64: 1, 64>}, {pipeline_mode = #tpu.pipeline_mode<synchronous>, transform_indices = @transform_7, window_bounds = array<i64: 64, 64>}, {pipeline_mode = #tpu.pipeline_mode<synchronous>, transform_indices = @transform_8, window_bounds = array<i64: 2, 16, 64>}]} {
    %c0 = arith.constant 0 : index
    %c0_0 = arith.constant 0 : index
    %c0_1 = arith.constant 0 : index
    %0 = vector.load %arg1[%c0, %c0_0, %c0_1] : memref<2x16x64xf32, #tpu.memory_space<vmem>>, vector<2x16x64xf32>
    %cst = arith.constant 0.000000e+00 : f32
    %1 = vector.broadcast %cst : f32 to vector<2x8x64xf32>
    %c0_2 = arith.constant 0 : index
    %c0_3 = arith.constant 0 : index
    %c0_4 = arith.constant 0 : index
    %2 = vector.load %arg10[%c0_2, %c0_3, %c0_4] : memref<2x32x64xf32, #tpu.memory_space<vmem>>, vector<2x8x64xf32>
    tpu.vector_store %arg10[%c0_2, %c0_3, %c0_4], %1 {strides = array<i32>} : memref<2x32x64xf32, #tpu.memory_space<vmem>>, vector<2x8x64xf32>,
    %c0_5 = arith.constant 0 : index
    %c24 = arith.constant 24 : index
    %c0_6 = arith.constant 0 : index
    %3 = vector.load %arg10[%c0_5, %c24, %c0_6] : memref<2x32x64xf32, #tpu.memory_space<vmem>>, vector<2x8x64xf32>
    tpu.vector_store %arg10[%c0_5, %c24, %c0_6], %1 {strides = array<i32>} : memref<2x32x64xf32, #tpu.memory_space<vmem>>, vector<2x8x64xf32>,
    %c0_7 = arith.constant 0 : index
    %c8 = arith.constant 8 : index
    %c0_8 = arith.constant 0 : index
    %4 = vector.load %arg10[%c0_7, %c8, %c0_8] : memref<2x32x64xf32, #tpu.memory_space<vmem>>, vector<2x16x64xf32>
    tpu.vector_store %arg10[%c0_7, %c8, %c0_8], %0 {strides = array<i32>} : memref<2x32x64xf32, #tpu.memory_space<vmem>>, vector<2x16x64xf32>,
    %c0_9 = arith.constant 0 : index
    %c7 = arith.constant 7 : index
    %c0_10 = arith.constant 0 : index
    %5 = vector.load %arg10[%c0_9, %c7, %c0_10] : memref<2x32x64xf32, #tpu.memory_space<vmem>>, vector<2x16x64xf32>
    %6 = vector.shape_cast %5 : vector<2x16x64xf32> to vector<32x64xf32>
    %c0_11 = arith.constant 0 : index
    %c0_12 = arith.constant 0 : index
    %c0_13 = arith.constant 0 : index
    %7 = vector.load %arg2[%c0_11, %c0_12, %c0_13] : memref<3x64x64xf32, #tpu.memory_space<vmem>>, vector<1x64x64xf32>
    %8 = vector.shape_cast %7 : vector<1x64x64xf32> to vector<64x64xf32>
    %cst_14 = arith.constant dense<0.000000e+00> : vector<32x64xf32>
    %9 = tpu.matmul %6, %8, %cst_14 {dimension_numbers = #tpu.dot_dimension_numbers<[1], [0], [0], [1], [0, 0, 1, 1], [], []>} : vector<32x64xf32>, vector<64x64xf32>, vector<32x64xf32> -> vector<32x64xf32>
    %c0_15 = arith.constant 0 : index
    %c8_16 = arith.constant 8 : index
    %c0_17 = arith.constant 0 : index
    %10 = vector.load %arg10[%c0_15, %c8_16, %c0_17] : memref<2x32x64xf32, #tpu.memory_space<vmem>>, vector<2x16x64xf32>
    %11 = vector.shape_cast %10 : vector<2x16x64xf32> to vector<32x64xf32>
    %c1 = arith.constant 1 : index
    %c0_18 = arith.constant 0 : index
    %c0_19 = arith.constant 0 : index
    %12 = vector.load %arg2[%c1, %c0_18, %c0_19] : memref<3x64x64xf32, #tpu.memory_space<vmem>>, vector<1x64x64xf32>
    %13 = vector.shape_cast %12 : vector<1x64x64xf32> to vector<64x64xf32>
    %cst_20 = arith.constant dense<0.000000e+00> : vector<32x64xf32>
    %14 = tpu.matmul %11, %13, %cst_20 {dimension_numbers = #tpu.dot_dimension_numbers<[1], [0], [0], [1], [0, 0, 1, 1], [], []>} : vector<32x64xf32>, vector<64x64xf32>, vector<32x64xf32> -> vector<32x64xf32>
    %15 = arith.addf %9, %14 : vector<32x64xf32>
    %c0_21 = arith.constant 0 : index
    %c9 = arith.constant 9 : index
    %c0_22 = arith.constant 0 : index
    %16 = vector.load %arg10[%c0_21, %c9, %c0_22] : memref<2x32x64xf32, #tpu.memory_space<vmem>>, vector<2x16x64xf32>
    %17 = vector.shape_cast %16 : vector<2x16x64xf32> to vector<32x64xf32>
    %c2 = arith.constant 2 : index
    %c0_23 = arith.constant 0 : index
    %c0_24 = arith.constant 0 : index
    %18 = vector.load %arg2[%c2, %c0_23, %c0_24] : memref<3x64x64xf32, #tpu.memory_space<vmem>>, vector<1x64x64xf32>
    %19 = vector.shape_cast %18 : vector<1x64x64xf32> to vector<64x64xf32>
    %cst_25 = arith.constant dense<0.000000e+00> : vector<32x64xf32>
    %20 = tpu.matmul %17, %19, %cst_25 {dimension_numbers = #tpu.dot_dimension_numbers<[1], [0], [0], [1], [0, 0, 1, 1], [], []>} : vector<32x64xf32>, vector<64x64xf32>, vector<32x64xf32> -> vector<32x64xf32>
    %21 = arith.addf %15, %20 : vector<32x64xf32>
    %cst_26 = arith.constant dense<0.000000e+00> : vector<64xf32>
    %22 = vector.multi_reduction <add>, %21, %cst_26 [0] : vector<32x64xf32> to vector<64xf32>
    %23 = vector.shape_cast %22 : vector<64xf32> to vector<1x64xf32>
    %c0_27 = arith.constant 0 : index
    %c0_28 = arith.constant 0 : index
    %24 = vector.load %arg8[%c0_27, %c0_28] : memref<64x64xf32, #tpu.memory_space<vmem>>, vector<64x64xf32>
    %cst_29 = arith.constant dense<0.000000e+00> : vector<1x64xf32>
    %25 = tpu.matmul %23, %24, %cst_29 {dimension_numbers = #tpu.dot_dimension_numbers<[1], [0], [0], [1], [0, 0, 1, 1], [], []>} : vector<1x64xf32>, vector<64x64xf32>, vector<1x64xf32> -> vector<1x64xf32>
    %26 = arith.mulf %21, %21 : vector<32x64xf32>
    %cst_30 = arith.constant dense<0.000000e+00> : vector<64xf32>
    %27 = vector.multi_reduction <add>, %26, %cst_30 [0] : vector<32x64xf32> to vector<64xf32>
    %28 = vector.shape_cast %27 : vector<64xf32> to vector<1x64xf32>
    %c0_31 = arith.constant 0 : index
    %c0_32 = arith.constant 0 : index
    %29 = vector.load %arg8[%c0_31, %c0_32] : memref<64x64xf32, #tpu.memory_space<vmem>>, vector<64x64xf32>
    %cst_33 = arith.constant dense<0.000000e+00> : vector<1x64xf32>
    %30 = tpu.matmul %28, %29, %cst_33 {dimension_numbers = #tpu.dot_dimension_numbers<[1], [0], [0], [1], [0, 0, 1, 1], [], []>} : vector<1x64xf32>, vector<64x64xf32>, vector<1x64xf32> -> vector<1x64xf32>
    %cst_34 = arith.constant 0.001953125 : f32
    %31 = vector.broadcast %cst_34 : f32 to vector<1x64xf32>
    %32 = arith.mulf %25, %31 : vector<1x64xf32>
    %cst_35 = arith.constant 0.001953125 : f32
    %33 = vector.broadcast %cst_35 : f32 to vector<1x64xf32>
    %34 = arith.mulf %30, %33 : vector<1x64xf32>
    %35 = arith.mulf %32, %32 : vector<1x64xf32>
    %36 = arith.subf %34, %35 : vector<1x64xf32>
    %cst_36 = arith.constant 0.000000e+00 : f32
    %37 = vector.broadcast %cst_36 : f32 to vector<1x64xf32>
    %38 = arith.maximumf %36, %37 : vector<1x64xf32>
    %c0_37 = arith.constant 0 : index
    %c0_38 = arith.constant 0 : index
    %39 = vector.load %arg4[%c0_37, %c0_38] : memref<1x64xf32, #tpu.memory_space<vmem>>, vector<1x64xf32>
    %cst_39 = arith.constant 9.99999974E-6 : f32
    %40 = vector.broadcast %cst_39 : f32 to vector<1x64xf32>
    %41 = arith.addf %38, %40 : vector<1x64xf32>
    %42 = math.rsqrt %41 : vector<1x64xf32>
    %43 = arith.mulf %39, %42 : vector<1x64xf32>
    %c0_40 = arith.constant 0 : index
    %c0_41 = arith.constant 0 : index
    %44 = vector.load %arg5[%c0_40, %c0_41] : memref<1x64xf32, #tpu.memory_space<vmem>>, vector<1x64xf32>
    %45 = arith.mulf %32, %43 : vector<1x64xf32>
    %46 = arith.subf %44, %45 : vector<1x64xf32>
    %47 = vector.broadcast %43 : vector<1x64xf32> to vector<32x64xf32>
    %48 = arith.mulf %21, %47 : vector<32x64xf32>
    %49 = vector.broadcast %46 : vector<1x64xf32> to vector<32x64xf32>
    %50 = arith.addf %48, %49 : vector<32x64xf32>
    %cst_42 = arith.constant 0.000000e+00 : f32
    %51 = vector.broadcast %cst_42 : f32 to vector<32x64xf32>
    %52 = arith.maximumf %50, %51 : vector<32x64xf32>
    %53 = vector.shape_cast %52 : vector<32x64xf32> to vector<2x16x64xf32>
    %c0_43 = arith.constant 0 : index
    %c8_44 = arith.constant 8 : index
    %c0_45 = arith.constant 0 : index
    %54 = vector.load %arg10[%c0_43, %c8_44, %c0_45] : memref<2x32x64xf32, #tpu.memory_space<vmem>>, vector<2x16x64xf32>
    tpu.vector_store %arg10[%c0_43, %c8_44, %c0_45], %53 {strides = array<i32>} : memref<2x32x64xf32, #tpu.memory_space<vmem>>, vector<2x16x64xf32>,
    %c0_46 = arith.constant 0 : index
    %c7_47 = arith.constant 7 : index
    %c0_48 = arith.constant 0 : index
    %55 = vector.load %arg10[%c0_46, %c7_47, %c0_48] : memref<2x32x64xf32, #tpu.memory_space<vmem>>, vector<2x16x64xf32>
    %56 = vector.shape_cast %55 : vector<2x16x64xf32> to vector<32x64xf32>
    %c0_49 = arith.constant 0 : index
    %c0_50 = arith.constant 0 : index
    %c0_51 = arith.constant 0 : index
    %57 = vector.load %arg3[%c0_49, %c0_50, %c0_51] : memref<3x64x64xf32, #tpu.memory_space<vmem>>, vector<1x64x64xf32>
    %58 = vector.shape_cast %57 : vector<1x64x64xf32> to vector<64x64xf32>
    %cst_52 = arith.constant dense<0.000000e+00> : vector<32x64xf32>
    %59 = tpu.matmul %56, %58, %cst_52 {dimension_numbers = #tpu.dot_dimension_numbers<[1], [0], [0], [1], [0, 0, 1, 1], [], []>} : vector<32x64xf32>, vector<64x64xf32>, vector<32x64xf32> -> vector<32x64xf32>
    %c0_53 = arith.constant 0 : index
    %c8_54 = arith.constant 8 : index
    %c0_55 = arith.constant 0 : index
    %60 = vector.load %arg10[%c0_53, %c8_54, %c0_55] : memref<2x32x64xf32, #tpu.memory_space<vmem>>, vector<2x16x64xf32>
    %61 = vector.shape_cast %60 : vector<2x16x64xf32> to vector<32x64xf32>
    %c1_56 = arith.constant 1 : index
    %c0_57 = arith.constant 0 : index
    %c0_58 = arith.constant 0 : index
    %62 = vector.load %arg3[%c1_56, %c0_57, %c0_58] : memref<3x64x64xf32, #tpu.memory_space<vmem>>, vector<1x64x64xf32>
    %63 = vector.shape_cast %62 : vector<1x64x64xf32> to vector<64x64xf32>
    %cst_59 = arith.constant dense<0.000000e+00> : vector<32x64xf32>
    %64 = tpu.matmul %61, %63, %cst_59 {dimension_numbers = #tpu.dot_dimension_numbers<[1], [0], [0], [1], [0, 0, 1, 1], [], []>} : vector<32x64xf32>, vector<64x64xf32>, vector<32x64xf32> -> vector<32x64xf32>
    %65 = arith.addf %59, %64 : vector<32x64xf32>
    %c0_60 = arith.constant 0 : index
    %c9_61 = arith.constant 9 : index
    %c0_62 = arith.constant 0 : index
    %66 = vector.load %arg10[%c0_60, %c9_61, %c0_62] : memref<2x32x64xf32, #tpu.memory_space<vmem>>, vector<2x16x64xf32>
    %67 = vector.shape_cast %66 : vector<2x16x64xf32> to vector<32x64xf32>
    %c2_63 = arith.constant 2 : index
    %c0_64 = arith.constant 0 : index
    %c0_65 = arith.constant 0 : index
    %68 = vector.load %arg3[%c2_63, %c0_64, %c0_65] : memref<3x64x64xf32, #tpu.memory_space<vmem>>, vector<1x64x64xf32>
    %69 = vector.shape_cast %68 : vector<1x64x64xf32> to vector<64x64xf32>
    %cst_66 = arith.constant dense<0.000000e+00> : vector<32x64xf32>
    %70 = tpu.matmul %67, %69, %cst_66 {dimension_numbers = #tpu.dot_dimension_numbers<[1], [0], [0], [1], [0, 0, 1, 1], [], []>} : vector<32x64xf32>, vector<64x64xf32>, vector<32x64xf32> -> vector<32x64xf32>
    %71 = arith.addf %65, %70 : vector<32x64xf32>
    %cst_67 = arith.constant dense<0.000000e+00> : vector<64xf32>
    %72 = vector.multi_reduction <add>, %71, %cst_67 [0] : vector<32x64xf32> to vector<64xf32>
    %73 = vector.shape_cast %72 : vector<64xf32> to vector<1x64xf32>
    %c0_68 = arith.constant 0 : index
    %c0_69 = arith.constant 0 : index
    %74 = vector.load %arg8[%c0_68, %c0_69] : memref<64x64xf32, #tpu.memory_space<vmem>>, vector<64x64xf32>
    %cst_70 = arith.constant dense<0.000000e+00> : vector<1x64xf32>
    %75 = tpu.matmul %73, %74, %cst_70 {dimension_numbers = #tpu.dot_dimension_numbers<[1], [0], [0], [1], [0, 0, 1, 1], [], []>} : vector<1x64xf32>, vector<64x64xf32>, vector<1x64xf32> -> vector<1x64xf32>
    %76 = arith.mulf %71, %71 : vector<32x64xf32>
    %cst_71 = arith.constant dense<0.000000e+00> : vector<64xf32>
    %77 = vector.multi_reduction <add>, %76, %cst_71 [0] : vector<32x64xf32> to vector<64xf32>
    %78 = vector.shape_cast %77 : vector<64xf32> to vector<1x64xf32>
    %c0_72 = arith.constant 0 : index
    %c0_73 = arith.constant 0 : index
    %79 = vector.load %arg8[%c0_72, %c0_73] : memref<64x64xf32, #tpu.memory_space<vmem>>, vector<64x64xf32>
    %cst_74 = arith.constant dense<0.000000e+00> : vector<1x64xf32>
    %80 = tpu.matmul %78, %79, %cst_74 {dimension_numbers = #tpu.dot_dimension_numbers<[1], [0], [0], [1], [0, 0, 1, 1], [], []>} : vector<1x64xf32>, vector<64x64xf32>, vector<1x64xf32> -> vector<1x64xf32>
    %cst_75 = arith.constant 0.001953125 : f32
    %81 = vector.broadcast %cst_75 : f32 to vector<1x64xf32>
    %82 = arith.mulf %75, %81 : vector<1x64xf32>
    %cst_76 = arith.constant 0.001953125 : f32
    %83 = vector.broadcast %cst_76 : f32 to vector<1x64xf32>
    %84 = arith.mulf %80, %83 : vector<1x64xf32>
    %85 = arith.mulf %82, %82 : vector<1x64xf32>
    %86 = arith.subf %84, %85 : vector<1x64xf32>
    %cst_77 = arith.constant 0.000000e+00 : f32
    %87 = vector.broadcast %cst_77 : f32 to vector<1x64xf32>
    %88 = arith.maximumf %86, %87 : vector<1x64xf32>
    %c0_78 = arith.constant 0 : index
    %c0_79 = arith.constant 0 : index
    %89 = vector.load %arg6[%c0_78, %c0_79] : memref<1x64xf32, #tpu.memory_space<vmem>>, vector<1x64xf32>
    %cst_80 = arith.constant 9.99999974E-6 : f32
    %90 = vector.broadcast %cst_80 : f32 to vector<1x64xf32>
    %91 = arith.addf %88, %90 : vector<1x64xf32>
    %92 = math.rsqrt %91 : vector<1x64xf32>
    %93 = arith.mulf %89, %92 : vector<1x64xf32>
    %c0_81 = arith.constant 0 : index
    %c0_82 = arith.constant 0 : index
    %94 = vector.load %arg7[%c0_81, %c0_82] : memref<1x64xf32, #tpu.memory_space<vmem>>, vector<1x64xf32>
    %95 = arith.mulf %82, %93 : vector<1x64xf32>
    %96 = arith.subf %94, %95 : vector<1x64xf32>
    %97 = vector.shape_cast %0 : vector<2x16x64xf32> to vector<32x64xf32>
    %98 = vector.broadcast %93 : vector<1x64xf32> to vector<32x64xf32>
    %99 = arith.mulf %71, %98 : vector<32x64xf32>
    %100 = vector.broadcast %96 : vector<1x64xf32> to vector<32x64xf32>
    %101 = arith.addf %99, %100 : vector<32x64xf32>
    %102 = arith.addf %101, %97 : vector<32x64xf32>
    %cst_83 = arith.constant 0.000000e+00 : f32
    %103 = vector.broadcast %cst_83 : f32 to vector<32x64xf32>
    %104 = arith.maximumf %102, %103 : vector<32x64xf32>
    %105 = vector.shape_cast %104 : vector<32x64xf32> to vector<2x16x64xf32>
    %c0_84 = arith.constant 0 : index
    %c0_85 = arith.constant 0 : index
    %c0_86 = arith.constant 0 : index
    %106 = vector.load %arg9[%c0_84, %c0_85, %c0_86] : memref<2x16x64xf32, #tpu.memory_space<vmem>>, vector<2x16x64xf32>
    tpu.vector_store %arg9[%c0_84, %c0_85, %c0_86], %105 {strides = array<i32>} : memref<2x16x64xf32, #tpu.memory_space<vmem>>, vector<2x16x64xf32>,
    return
  }
  func.func @transform_0(%arg0: i32) -> (i32, i32, i32) {
    %c0_i32 = arith.constant 0 : i32
    %c0_i32_0 = arith.constant 0 : i32
    %c0_i32_1 = arith.constant 0 : i32
    %c0_i32_2 = arith.constant 0 : i32
    return %c0_i32, %c0_i32_0, %c0_i32_1 : i32, i32, i32
  }
  func.func @transform_1(%arg0: i32) -> (i32, i32, i32) {
    %c0_i32 = arith.constant 0 : i32
    %c0_i32_0 = arith.constant 0 : i32
    %c0_i32_1 = arith.constant 0 : i32
    %c0_i32_2 = arith.constant 0 : i32
    return %c0_i32, %c0_i32_0, %c0_i32_1 : i32, i32, i32
  }
  func.func @transform_2(%arg0: i32) -> (i32, i32, i32) {
    %c0_i32 = arith.constant 0 : i32
    %c0_i32_0 = arith.constant 0 : i32
    %c0_i32_1 = arith.constant 0 : i32
    %c0_i32_2 = arith.constant 0 : i32
    return %c0_i32, %c0_i32_0, %c0_i32_1 : i32, i32, i32
  }
  func.func @transform_3(%arg0: i32) -> (i32, i32) {
    %c0_i32 = arith.constant 0 : i32
    %c0_i32_0 = arith.constant 0 : i32
    %c0_i32_1 = arith.constant 0 : i32
    return %c0_i32, %c0_i32_0 : i32, i32
  }
  func.func @transform_4(%arg0: i32) -> (i32, i32) {
    %c0_i32 = arith.constant 0 : i32
    %c0_i32_0 = arith.constant 0 : i32
    %c0_i32_1 = arith.constant 0 : i32
    return %c0_i32, %c0_i32_0 : i32, i32
  }
  func.func @transform_5(%arg0: i32) -> (i32, i32) {
    %c0_i32 = arith.constant 0 : i32
    %c0_i32_0 = arith.constant 0 : i32
    %c0_i32_1 = arith.constant 0 : i32
    return %c0_i32, %c0_i32_0 : i32, i32
  }
  func.func @transform_6(%arg0: i32) -> (i32, i32) {
    %c0_i32 = arith.constant 0 : i32
    %c0_i32_0 = arith.constant 0 : i32
    %c0_i32_1 = arith.constant 0 : i32
    return %c0_i32, %c0_i32_0 : i32, i32
  }
  func.func @transform_7(%arg0: i32) -> (i32, i32) {
    %c0_i32 = arith.constant 0 : i32
    %c0_i32_0 = arith.constant 0 : i32
    %c0_i32_1 = arith.constant 0 : i32
    return %c0_i32, %c0_i32_0 : i32, i32
  }
  func.func @transform_8(%arg0: i32) -> (i32, i32, i32) {
    %c0_i32 = arith.constant 0 : i32
    %c0_i32_0 = arith.constant 0 : i32
    %c0_i32_1 = arith.constant 0 : i32
    %c0_i32_2 = arith.constant 0 : i32
    return %c0_i32, %c0_i32_0, %c0_i32_1 : i32, i32, i32
  }
}

</mosaic_0001>

<bundles_post_ra>
// kernel: tpu_custom_call.1
= control target key start
LH: loop header
LB: loop body
LE: loop exit
PB: predicated region body
PF: predicated region fallthrough
CT: control target
= control target key end

     0   :  { %13 = vsyncpa [#allocation4], 0  ;;  %s2191_s0 = inlined_call_operand.hbm [shape: f32[2,16,64], index: 0, kind: input, shape index: {}]   ;;  %s2192_s1 = inlined_call_operand.hbm [shape: f32[3,64,64], index: 1, kind: input, shape index: {}]   ;;  %s2193_s2 = inlined_call_operand.hbm [shape: f32[3,64,64], index: 2, kind: input, shape index: {}]   ;;  %s2194_s3 = inlined_call_operand.vmem [shape: f32[1,64], index: 3, kind: input, shape index: {}]   ;;  %s2195_s4 = inlined_call_operand.vmem [shape: f32[1,64], index: 4, kind: input, shape index: {}]   ;;  %s2196_s5 = inlined_call_operand.vmem [shape: f32[1,64], index: 5, kind: input, shape index: {}]   ;;  %s2197_s6 = inlined_call_operand.vmem [shape: f32[1,64], index: 6, kind: input, shape index: {}]   ;;  %s2198_s7 = inlined_call_operand.hbm [shape: f32[64,64], index: 7, kind: input, shape index: {}]   ;;  %s2199_s8 = inlined_call_operand.hbm [shape: f32[2,16,64], index: 8, kind: output, shape index: {}]  }
   0x1   :  { %14 = vsyncpa [#allocation7], 0 }
   0x2   :  { %15 = vsyncpa [#allocation10], 0 }
   0x3   :  { %16 = vsyncpa [#allocation5], 0  ;;  %s1871_s27 = smov [#allocation6]   ;;  %s1872_s29 = smov [#allocation3]  }
   0x4   :  { %s34_s28 = sshll.u32 %s1871_s27, 4  ;;  %s22_s30 = sshll.u32 %s1872_s29, 4  ;;  %s35_s28 = int_to_ptr.vmem [resolvable:$true] %s34_s28  ;;  %s1926_s30 = int_to_ptr.vmem [resolvable:$true] %s22_s30 }
   0x5   :  { %s1753_s11 = scalar_lea.hbm %s2192_s1, 3072 }
   0x6   :  { %p1754_p0 = scmp.ne.s32.totalorder %s2192_s1, %s1753_s11  ;;  %p1757_p1 = scmp.lt.u32.totalorder %s1753_s11, %s2192_s1 }
   0x8   :  { %p1759_p2 = pnand %p1757_p1, %p1754_p0 }
   0xa   :  { %1762 = shalt.err (!%p1759_p2)
}
   0xb   :  { %s1763_s16 = scalar_lea.vmem %s35_s28, 3072  ;;  %p1768_p4 = scmp.lt.s32.totalorder %s35_s28, %s35_s28 }
   0xc   :  { %p1764_p3 = scmp.ne.s32.totalorder %s35_s28, %s1763_s16  ;;  %p1769_p5 = scmp.lt.s32.totalorder %s1763_s16, %s1763_s16 }
   0xe   :  { %p1770_p6 = por %p1769_p5, %p1768_p4 }
  0x10   :  { %p1771_p7 = pnand %p1770_p6, %p1764_p3 }
  0x12   :  { %1774 = shalt.err (!%p1771_p7)
}
  0x13   :  { %s1873_s17 = smov 128   ;;  %s1874_s18 = smov 8  }
  0x14   :  { %40 = dma.hbm_to_vmem [thread:$0]  %s2192_s1, 3072, %s35_s28, [#allocation7], %s1873_s17, %s1873_s17, %s1874_s18  }
  0x15   :  { %s1775_s23 = scalar_lea.hbm %s2191_s0, 512 }
  0x16   :  { %p1776_p8 = scmp.ne.s32.totalorder %s2191_s0, %s1775_s23  ;;  %p1779_p9 = scmp.lt.u32.totalorder %s1775_s23, %s2191_s0 }
  0x18   :  { %p1781_p10 = pnand %p1779_p9, %p1776_p8 }
  0x1a   :  { %1784 = shalt.err (!%p1781_p10)
}
  0x1b   :  { %s1785_s29 = scalar_lea.vmem %s1926_s30, 512  ;;  %p1790_p12 = scmp.lt.s32.totalorder %s1926_s30, %s1926_s30 }
  0x1c   :  { %p1786_p11 = scmp.ne.s32.totalorder %s1926_s30, %s1785_s29  ;;  %p1791_p13 = scmp.lt.s32.totalorder %s1785_s29, %s1785_s29 }
  0x1e   :  { %p1792_p0 = por %p1791_p13, %p1790_p12 }
  0x20   :  { %p1793_p1 = pnand %p1792_p0, %p1786_p11 }
  0x22   :  { %1796 = shalt.err (!%p1793_p1)
}
  0x23   :  { %28 = dma.hbm_to_vmem [thread:$0]  %s2191_s0, 512, %s1926_s30, [#allocation4], %s1873_s17, %s1873_s17, %s1874_s18  }
  0x24   :  { %s1875_s9 = smov [#allocation8]   ;;  %s1876_s11 = smov [#allocation9]  }
  0x25   :  { %s46_s10 = sshll.u32 %s1875_s9, 4  ;;  %s66_s12 = sshll.u32 %s1876_s11, 4  ;;  %s47_s10 = int_to_ptr.vmem [resolvable:$true] %s46_s10  ;;  %s1963_s12 = int_to_ptr.vmem [resolvable:$true] %s66_s12 }
  0x26   :  { %s1797_s15 = scalar_lea.hbm %s2193_s2, 3072 }
  0x27   :  { %p1798_p2 = scmp.ne.s32.totalorder %s2193_s2, %s1797_s15  ;;  %p1801_p3 = scmp.lt.u32.totalorder %s1797_s15, %s2193_s2 }
  0x29   :  { %p1803_p4 = pnand %p1801_p3, %p1798_p2 }
  0x2b   :  { %1806 = shalt.err (!%p1803_p4)
}
  0x2c   :  { %s1807_s0 = scalar_lea.vmem %s47_s10, 3072  ;;  %p1812_p6 = scmp.lt.s32.totalorder %s47_s10, %s47_s10 }
  0x2d   :  { %p1808_p5 = scmp.ne.s32.totalorder %s47_s10, %s1807_s0  ;;  %p1813_p7 = scmp.lt.s32.totalorder %s1807_s0, %s1807_s0 }
  0x2f   :  { %p1814_p8 = por %p1813_p7, %p1812_p6 }
  0x31   :  { %p1815_p9 = pnand %p1814_p8, %p1808_p5 }
  0x33   :  { %1818 = shalt.err (!%p1815_p9)
}
  0x34   :  { %52 = dma.hbm_to_vmem [thread:$0]  %s2193_s2, 3072, %s47_s10, [#allocation7], %s1873_s17, %s1873_s17, %s1874_s18  }
  0x35   :  { %s1819_s25 = scalar_lea.hbm %s2198_s7, 1024 }
  0x36   :  { %p1820_p10 = scmp.ne.s32.totalorder %s2198_s7, %s1819_s25  ;;  %p1823_p11 = scmp.lt.u32.totalorder %s1819_s25, %s2198_s7 }
  0x38   :  { %p1825_p12 = pnand %p1823_p11, %p1820_p10 }
  0x3a   :  { %1828 = shalt.err (!%p1825_p12)
}
  0x3b   :  { %s1829_s28 = scalar_lea.vmem %s1963_s12, 1024  ;;  %p1834_p0 = scmp.lt.s32.totalorder %s1963_s12, %s1963_s12 }
  0x3c   :  { %p1830_p13 = scmp.ne.s32.totalorder %s1963_s12, %s1829_s28  ;;  %p1835_p1 = scmp.lt.s32.totalorder %s1829_s28, %s1829_s28 }
  0x3e   :  { %p1836_p2 = por %p1835_p1, %p1834_p0 }
  0x40   :  { %p1837_p3 = pnand %p1836_p2, %p1830_p13 }
  0x42   :  { %1840 = shalt.err (!%p1837_p3)
}
  0x43   :  { %72 = dma.hbm_to_vmem [thread:$0]  %s2198_s7, 1024, %s1963_s12, [#allocation10], %s1873_s17, %s1873_s17, %s1874_s18  }
  0x44   :  { %1863 = dma.done.wait [#allocation4], 512  }
  0x45   :  { %1864 = vsyncadd [#allocation4], 4294966784 }
  0x46   :  { %1865 = dma.done.wait [#allocation7], 6144  }
  0x47   :  { %1866 = vsyncadd [#allocation7], 4294961152 }
  0x48   :  { %1867 = dma.done.wait [#allocation10], 1024  }
  0x49   :  { %1868 = vsyncadd [#allocation10], 4294966272  ;;  %vm89_vm0 = vcmask 523264   ;;  %v1877_v0 = vmov 0.0   ;;  %v115_v1 = vld [vmem:[#allocation6 + $0x40] sm:$0xff]  ;;  %v116_v2 = vld [vmem:[#allocation6 + $0x48] sm:$0xff] }
  0x4a   :  { %90 = vst.msk [vmem:[#allocation2] sm:$0xff] %vm89_vm0, %v1877_v0  ;;  %91 = vst.msk [vmem:[#allocation2 + $0x20] sm:$0xff] %vm89_vm0, %v1877_v0  ;;  %v117_v3 = vld [vmem:[#allocation6 + $0x50] sm:$0xff]  ;;  %v1579_v4 = vpack.c.bf16 %v116_v2, %v115_v1  ;;  %v118_v5 = vld [vmem:[#allocation6 + $0x58] sm:$0xff]  ;;  %v1878_v56 = vmov 0.0|0.0   ;;  %vm1879_vm1 = vmmov 0  }
  0x4b   :  { %92 = vst.msk [vmem:[#allocation2 + $0x18] sm:$0xff] %vm89_vm0, %v1877_v0  ;;  %93 = vst.msk [vmem:[#allocation2 + $0x38] sm:$0xff] %vm89_vm0, %v1877_v0  ;;  %v1583_v6 = vpack.c.bf16 %v118_v5, %v117_v3  ;;  %v119_v7 = vld [vmem:[#allocation6 + $0x60] sm:$0xff]  ;;  %v120_v8 = vld [vmem:[#allocation6 + $0x68] sm:$0xff]  ;;  %1627 = vmatprep.subr.bf16.mxu1 %v1878_v56  ;;  %1453 = vmatprep.mubr.msk.f32.mxu1 %vm1879_vm1, %v1877_v0 }
  0x4c   :  { %v2008_v9 = vld [vmem:[#allocation3] sm:$0xff]  ;;  %1580 = vmatprep.subr.bf16.mxu0 %v1579_v4  ;;  %v2012_v10 = vld [vmem:[#allocation3 + $0x8] sm:$0xff]  ;;  %v1587_v11 = vpack.c.bf16 %v120_v8, %v119_v7  ;;  %v2016_v12 = vld [vmem:[#allocation3 + $0x10] sm:$0xff] }
  0x4d   :  { %94 = vst.msk [vmem:[#allocation2 + $0x8] sm:$0xff] %vm89_vm0, %v2008_v9  ;;  %1582 = vmatpush3.bf16.msra.mxu0 %v1579_v4  ;;  %95 = vst.msk [vmem:[#allocation2 + $0x10] sm:$0xff] %vm89_vm0, %v2012_v10  ;;  %v121_v13 = vld [vmem:[#allocation6 + $0x70] sm:$0xff]  ;;  %v122_v14 = vld [vmem:[#allocation6 + $0x78] sm:$0xff] }
  0x4e   :  { %1584 = vmatprep.subr.bf16.mxu0 %v1583_v6  ;;  %96 = vst.msk [vmem:[#allocation2 + $0x28] sm:$0xff] %vm89_vm0, %v2016_v12  ;;  %v2020_v15 = vld [vmem:[#allocation3 + $0x18] sm:$0xff]  ;;  %v1591_v16 = vpack.c.bf16 %v122_v14, %v121_v13  ;;  %v102_v18 = vld [vmem:[#allocation6] sm:$0xff]  ;;  %v103_v19 = vld [vmem:[#allocation6 + $0x8] sm:$0xff] }
  0x4f   :  { %97 = vst.msk [vmem:[#allocation2 + $0x30] sm:$0xff] %vm89_vm0, %v2020_v15  ;;  %v1595_v20 = vpack.c.bf16 %v103_v19, %v102_v18  ;;  %v104_v21 = vld [vmem:[#allocation6 + $0x10] sm:$0xff]  ;;  %v105_v22 = vld [vmem:[#allocation6 + $0x18] sm:$0xff]  ;;  %v106_v26 = vld [vmem:[#allocation6 + $0x20] sm:$0xff] }
  0x50   :  { %v1599_v24 = vpack.c.bf16 %v105_v22, %v104_v21  ;;  %v107_v27 = vld [vmem:[#allocation6 + $0x28] sm:$0xff]  ;;  %v108_v31 = vld [vmem:[#allocation6 + $0x30] sm:$0xff]  ;;  %v109_v32 = vld [vmem:[#allocation6 + $0x38] sm:$0xff] }
  0x51   :  { %1586 = vmatpush3.bf16.msra.mxu0 %v1583_v6  ;;  %v1603_v29 = vpack.c.bf16 %v107_v27, %v106_v26  ;;  %v1607_v33 = vpack.c.bf16 %v109_v32, %v108_v31  ;;  %v322_v34 = vld [vmem:[#allocation6 + $0x80] sm:$0xff]  ;;  %v323_v35 = vld [vmem:[#allocation6 + $0x88] sm:$0xff]  ;;  %v324_v37 = vld [vmem:[#allocation6 + $0x90] sm:$0xff] }
  0x52   :  { %1588 = vmatprep.subr.bf16.mxu0 %v1587_v11  ;;  %v1611_v36 = vpack.c.bf16 %v323_v35, %v322_v34  ;;  %v325_v38 = vld [vmem:[#allocation6 + $0x98] sm:$0xff]  ;;  %v326_v42 = vld [vmem:[#allocation6 + $0xa0] sm:$0xff]  ;;  %v327_v43 = vld [vmem:[#allocation6 + $0xa8] sm:$0xff] }
  0x53   :  { %v1615_v40 = vpack.c.bf16 %v325_v38, %v324_v37  ;;  %v1619_v45 = vpack.c.bf16 %v327_v43, %v326_v42  ;;  %v328_v47 = vld [vmem:[#allocation6 + $0xb0] sm:$0xff]  ;;  %v329_v48 = vld [vmem:[#allocation6 + $0xb8] sm:$0xff]  ;;  %v444_v53 = vld [vmem:[#allocation9] sm:$0xff] }
  0x54   :  { %v110_v17 = vld [vmem:[#allocation2 + $0x8] sm:$0xff]  ;;  %v111_v23 = vld [vmem:[#allocation2 + $0x10] sm:$0xff]  ;;  %v1623_v49 = vpack.c.bf16 %v329_v48, %v328_v47  ;;  %v447_v58 = vld [vmem:[#allocation9 + $0x18] sm:$0xff] }
  0x55   :  { %1387 = vmatprep.mubr.msk.f32.mxu0 %vm89_vm0, %v110_v17  ;;  %1590 = vmatpush3.bf16.msra.mxu0 %v1587_v11  ;;  %v112_v25 = vld [vmem:[#allocation2 + $0x28] sm:$0xff]  ;;  %v318_v50 = vld [vmem:[#allocation2 + $0x11] sm:$0xff]  ;;  %v448_v60 = vld [vmem:[#allocation9 + $0x20] sm:$0xff] }
  0x56   :  { %1592 = vmatprep.subr.bf16.mxu0 %v1591_v16  ;;  %v113_v28 = vld [vmem:[#allocation2 + $0x30] sm:$0xff]  ;;  %v98_v30 = vld [vmem:[#allocation2 + $0x7] sm:$0xff]  ;;  %v451_v1 = vld [vmem:[#allocation9 + $0x38] sm:$0xff] }
  0x57   :  { %v99_v39 = vld [vmem:[#allocation2 + $0xf] sm:$0xff]  ;;  %v100_v41 = vld [vmem:[#allocation2 + $0x27] sm:$0xff] }
  0x58   :  { %v101_v44 = vld [vmem:[#allocation2 + $0x2f] sm:$0xff]  ;;  %v676_v47 = vld [vmem:[#allocation8 + $0x60] sm:$0xff] }
  0x59   :  { %1594 = vmatpush3.bf16.msra.mxu0 %v1591_v16  ;;  %v317_v46 = vld [vmem:[#allocation2 + $0x9] sm:$0xff]  ;;  %v320_v52 = vld [vmem:[#allocation2 + $0x31] sm:$0xff] }
  0x5a   :  { %1596 = vmatprep.subr.bf16.mxu0 %v1595_v20  ;;  %v319_v51 = vld [vmem:[#allocation2 + $0x29] sm:$0xff] }
  0x5b   :  { %v445_v54 = vld [vmem:[#allocation9 + $0x8] sm:$0xff]  ;;  %v446_v57 = vld [vmem:[#allocation9 + $0x10] sm:$0xff] }
  0x5c   :  { %1388 = vmatmul.mubr.msk.f32.vlgmr.msra.gmra.mrb[0].mxu0 %vm89_vm0, %v111_v23  ;;  %v2036_v55 = vpack.c.bf16 %v445_v54, %v444_v53  ;;  %v2044_v59 = vpack.c.bf16 %v447_v58, %v446_v57  ;;  %v449_v61 = vld [vmem:[#allocation9 + $0x28] sm:$0xff]  ;;  %v450_v63 = vld [vmem:[#allocation9 + $0x30] sm:$0xff]  ;;  %v659_v53 = vld [vmem:[#allocation8] sm:$0xff] }
  0x5d   :  { %1598 = vmatpush3.bf16.msra.mxu0 %v1595_v20  ;;  %1390 = vmatprep.mubr.msk.f32.mxu0 %vm89_vm0, %v112_v25  ;;  %v2050_v62 = vpack.c.bf16 %v449_v61, %v448_v60  ;;  %v2056_v2 = vpack.c.bf16 %v451_v1, %v450_v63  ;;  %v673_v42 = vld [vmem:[#allocation8 + $0x48] sm:$0xff] }
  0x5e   :  { %1600 = vmatprep.subr.bf16.mxu0 %v1599_v24  ;;  %1629 = vmatpush3.bf16.msra.mxu1 %v2036_v55  ;;  %v677_v48 = vld [vmem:[#allocation8 + $0x68] sm:$0xff] }
  0x5f   :  { %1630 = vmatprep.subr.bf16.mxu1 %v1878_v56  ;;  %v660_v54 = vld [vmem:[#allocation8 + $0x8] sm:$0xff] }
  0x60   :  { %1391 = vmatmul.mubr.msk.f32.gmra.mrb[2].mxu0 %vm89_vm0, %v113_v28  ;;  %v1667_v57 = vpack.c.bf16 %v660_v54, %v659_v53  ;;  %v882_v53 = vld [vmem:[#allocation8 + $0x98] sm:$0xff] }
  0x61   :  { %1602 = vmatpush3.bf16.msra.mxu0 %v1599_v24  ;;  %1409 = vmatprep.mubr.msk.f32.mxu0 %vm89_vm0, %v98_v30 }
  0x62   :  { %1604 = vmatprep.subr.bf16.mxu0 %v1603_v29  ;;  %1632 = vmatpush3.bf16.msra.mxu1 %v2044_v59 }
  0x63   :  { %1633 = vmatprep.subr.bf16.mxu1 %v1878_v56 }
  0x65   :  { %1606 = vmatpush3.bf16.msra.mxu0 %v1603_v29 }
  0x66   :  { %1608 = vmatprep.subr.bf16.mxu0 %v1607_v33  ;;  %1635 = vmatpush3.bf16.msra.mxu1 %v2050_v62 }
  0x67   :  { %1636 = vmatprep.subr.bf16.mxu1 %v1878_v56 }
  0x69   :  { %1610 = vmatpush3.bf16.msra.mxu0 %v1607_v33 }
  0x6a   :  { %1612 = vmatprep.subr.bf16.mxu0 %v1611_v36  ;;  %1638 = vmatpush3.bf16.msra.mxu1 %v2056_v2 }
  0x6b   :  { %1639 = vmatprep.subr.bf16.mxu1 %v1878_v56 }
  0x6c   :  { %1410 = vmatmul.mubr.msk.f32.vlgmr.msra.gmra.mrb[0].mxu0 %vm89_vm0, %v99_v39 }
  0x6d   :  { %1614 = vmatpush3.bf16.msra.mxu0 %v1611_v36  ;;  %1412 = vmatprep.mubr.msk.f32.mxu0 %vm89_vm0, %v100_v41  ;;  %v672_v41 = vld [vmem:[#allocation8 + $0x40] sm:$0xff] }
  0x6e   :  { %1616 = vmatprep.subr.bf16.mxu0 %v1615_v40  ;;  %v1651_v43 = vpack.c.bf16 %v673_v42, %v672_v41  ;;  %v664_v41 = vld [vmem:[#allocation8 + $0x28] sm:$0xff] }
  0x70   :  { %1413 = vmatmul.mubr.msk.f32.gmra.mrb[2].mxu0 %vm89_vm0, %v101_v44  ;;  %v674_v44 = vld [vmem:[#allocation8 + $0x50] sm:$0xff] }
  0x71   :  { %1618 = vmatpush3.bf16.msra.mxu0 %v1615_v40  ;;  %1431 = vmatprep.mubr.msk.f32.mxu0 %vm89_vm0, %v317_v46 }
  0x72   :  { %1620 = vmatprep.subr.bf16.mxu0 %v1619_v45 }
  0x75   :  { %1622 = vmatpush3.bf16.msra.mxu0 %v1619_v45  ;;  %v675_v45 = vld [vmem:[#allocation8 + $0x58] sm:$0xff] }
  0x76   :  { %1624 = vmatprep.subr.bf16.mxu0 %v1623_v49  ;;  %v1655_v46 = vpack.c.bf16 %v675_v45, %v674_v44  ;;  %v665_v45 = vld [vmem:[#allocation8 + $0x30] sm:$0xff] }
  0x79   :  { %1626 = vmatpush3.bf16.msra.mxu0 %v1623_v49  ;;  %v1659_v49 = vpack.c.bf16 %v677_v48, %v676_v47 }
  0x7a   :  { %1699 = vmatprep.subr.bf16.mxu0 %v1878_v56 }
  0x7c   :  { %1432 = vmatmul.mubr.msk.f32.vlgmr.msra.gmra.mrb[0].mxu0 %vm89_vm0, %v318_v50  ;;  %v678_v50 = vld [vmem:[#allocation8 + $0x70] sm:$0xff] }
  0x7d   :  { %1434 = vmatprep.mubr.msk.f32.mxu0 %vm89_vm0, %v319_v51  ;;  %1701 = vmatpush3.bf16.msra.mxu0 %v2036_v55  ;;  %v679_v51 = vld [vmem:[#allocation8 + $0x78] sm:$0xff] }
  0x7e   :  { %1702 = vmatprep.subr.bf16.mxu0 %v1878_v56 }
  0x80   :  { %1435 = vmatmul.mubr.msk.f32.gmra.mrb[2].mxu0 %vm89_vm0, %v320_v52  ;;  %v1663_v52 = vpack.c.bf16 %v679_v51, %v678_v50  ;;  %v880_v50 = vld [vmem:[#allocation8 + $0x88] sm:$0xff] }
  0x81   :  { %1704 = vmatpush3.bf16.msra.mxu0 %v2044_v59  ;;  %1557 = vmatprep.mubr.msk.f32.mxu0 %vm1879_vm1, %v1877_v0 }
  0x82   :  { %1705 = vmatprep.subr.bf16.mxu0 %v1878_v56 }
  0x85   :  { %1707 = vmatpush3.bf16.msra.mxu0 %v2050_v62 }
  0x86   :  { %1708 = vmatprep.subr.bf16.mxu0 %v1878_v56 }
  0x89   :  { %1710 = vmatpush3.bf16.msra.mxu0 %v2056_v2 }
  0x8a   :  { %1711 = vmatprep.subr.bf16.mxu0 %v1878_v56 }
 0x14f   :  { %v2066_v3 = vpop.f32.mrb[0].mxu0 }
 0x150   :  { %v432_v4 = vsel %vm89_vm0, %v2066_v3, 0.0  ;;  %v526_v5 = vmul.f32 %v2066_v3, %v2066_v3  ;;  %v2072_v6 = vpop.f32.mrb[1].mxu0 }
 0x151   :  { %v431_v7 = vsel %vm89_vm0, %v2072_v6, 0.0  ;;  %v525_v8 = vmul.f32 %v2072_v6, %v2072_v6 }
 0x152   :  { %v530_v11 = vsel %vm89_vm0, %v526_v5, 0.0  ;;  %v433_v13 = vadd.f32 %v432_v4, %v431_v7 }
 0x153   :  { %v529_v14 = vsel %vm89_vm0, %v525_v8, 0.0  ;;  %v2080_v16 = vpop.f32.mrb[2].mxu0 }
 0x154   :  { %v531_v17 = vadd.f32 %v530_v11, %v529_v14  ;;  %v2082_v18 = vpop.f32.mrb[3].mxu0  ;;  %v528_v19 = vmul.f32 %v2080_v16, %v2080_v16  ;;  %v436_v23 = vsel %vm89_vm0, %v2080_v16, 0.0 }
 0x155   :  { %v434_v20 = vsel %vm89_vm0, %v2082_v18, 0.0  ;;  %v527_v21 = vmul.f32 %v2082_v18, %v2082_v18 }
 0x156   :  { %v435_v22 = vadd.f32 %v434_v20, %v433_v13  ;;  %v534_v27 = vsel %vm89_vm0, %v528_v19, 0.0  ;;  %v628_v13 = vlaneseq }
 0x157   :  { %v532_v24 = vsel %vm89_vm0, %v527_v21, 0.0 }
 0x158   :  { %v437_v25 = vadd.f32 %v436_v23, %v435_v22  ;;  %v533_v26 = vadd.f32 %v532_v24, %v531_v17  ;;  %v629_v14 = vshrl.u32 %v628_v13, 7  ;;  %v620_v17 = vld [vmem:[%s2194_s3] sm:$0x1] }
 0x159   :  { %v624_v22 = vld [vmem:[%s2195_s4] sm:$0x1] }
 0x15a   :  { %v438_v28 = vrot.slane %v437_v25, 4  ;;  %v535_v29 = vadd.f32 %v534_v27, %v533_v26  ;;  %v2108_v19 = vsub.s32 0, %v629_v14 }
 0x15c   :  { %v439_v30 = vadd.f32 %v438_v28, %v437_v25  ;;  %v536_v32 = vrot.slane %v535_v29, 4 }
 0x15e   :  { %v440_v31 = vrot.slane %v439_v30, 2  ;;  %v537_v35 = vadd.f32 %v536_v32, %v535_v29 }
 0x160   :  { %v441_v33 = vadd.f32 %v440_v31, %v439_v30  ;;  %v538_v37 = vrot.slane %v537_v35, 2 }
 0x162   :  { %v442_v34 = vrot.slane %v441_v33, 1  ;;  %v539_v38 = vadd.f32 %v538_v37, %v537_v35 }
 0x164   :  { %v443_v36 = vadd.f32 %v442_v34, %v441_v33  ;;  %v540_v39 = vrot.slane %v539_v38, 1 }
 0x166   :  { %1454 = vmatmul.mubr.msk.f32.vlgmr.msra.gmra.mrb[0].mxu1 %vm89_vm0, %v443_v36  ;;  %v541_v40 = vadd.f32 %v540_v39, %v539_v38 }
 0x167   :  { %1641 = vmatpush3.bf16.msra.mxu1 %v2036_v55  ;;  %1472 = vmatprep.mubr.msk.f32.mxu1 %vm1879_vm1, %v1877_v0 }
 0x168   :  { %1642 = vmatprep.subr.bf16.mxu1 %v1878_v56 }
 0x16b   :  { %1644 = vmatpush3.bf16.msra.mxu1 %v2044_v59 }
 0x16c   :  { %1645 = vmatprep.subr.bf16.mxu1 %v1878_v56 }
 0x16f   :  { %1647 = vmatpush3.bf16.msra.mxu1 %v2050_v62 }
 0x170   :  { %1648 = vmatprep.subr.bf16.mxu1 %v1878_v56 }
 0x173   :  { %1650 = vmatpush3.bf16.msra.mxu1 %v2056_v2 }
 0x174   :  { %1652 = vmatprep.subr.bf16.mxu1 %v1651_v43 }
 0x176   :  { %1473 = vmatmul.mubr.msk.f32.vlgmr.msra.gmra.mrb[2].mxu1 %vm89_vm0, %v541_v40  ;;  %v663_v40 = vld [vmem:[#allocation8 + $0x20] sm:$0xff] }
 0x177   :  { %1654 = vmatpush3.bf16.msra.mxu1 %v1651_v43  ;;  %v1675_v43 = vpack.c.bf16 %v664_v41, %v663_v40 }
 0x178   :  { %1656 = vmatprep.subr.bf16.mxu1 %v1655_v46 }
 0x17b   :  { %1658 = vmatpush3.bf16.msra.mxu1 %v1655_v46  ;;  %v666_v46 = vld [vmem:[#allocation8 + $0x38] sm:$0xff] }
 0x17c   :  { %1660 = vmatprep.subr.bf16.mxu1 %v1659_v49  ;;  %v1679_v48 = vpack.c.bf16 %v666_v46, %v665_v45 }
 0x17f   :  { %1662 = vmatpush3.bf16.msra.mxu1 %v1659_v49  ;;  %v879_v49 = vld [vmem:[#allocation8 + $0x80] sm:$0xff] }
 0x180   :  { %1664 = vmatprep.subr.bf16.mxu1 %v1663_v52  ;;  %v1683_v51 = vpack.c.bf16 %v880_v50, %v879_v49 }
 0x183   :  { %1666 = vmatpush3.bf16.msra.mxu1 %v1663_v52  ;;  %v881_v52 = vld [vmem:[#allocation8 + $0x90] sm:$0xff] }
 0x184   :  { %1668 = vmatprep.subr.bf16.mxu1 %v1667_v57  ;;  %v1687_v54 = vpack.c.bf16 %v882_v53, %v881_v52 }
 0x239   :  { %v521_v58 = vpop.f32.mrb[0].mxu1 }
 0x23a   :  { %v1455_v60 = vpop.f32.mrb[1].mxu1  ;;  %v615_v61 = vmul.f32 0.001953125, %v521_v58  ;;  %v883_v58 = vld [vmem:[#allocation8 + $0xa0] sm:$0xff] }
 0x23b   :  { %v884_v60 = vld [vmem:[#allocation8 + $0xa8] sm:$0xff] }
 0x23c   :  { %v617_v1 = vmul.f32 %v615_v61, %v615_v61 }
 0x249   :  { %v611_v63 = vpop.f32.mrb[2].mxu1 }
 0x24a   :  { %v616_v4 = vmul.f32 0.001953125, %v611_v63  ;;  %v1474_v5 = vpop.f32.mrb[3].mxu1  ;;  %v1691_v63 = vpack.c.bf16 %v884_v60, %v883_v58  ;;  %v1181_v58 = vld [vmem:[%s2197_s6] sm:$0x1] }
 0x24b   :  { %v886_v5 = vld [vmem:[#allocation8 + $0xb8] sm:$0xff] }
 0x24c   :  { %v618_v7 = vsub.f32 %v616_v4, %v617_v1  ;;  %v885_v4 = vld [vmem:[#allocation8 + $0xb0] sm:$0xff] }
 0x24e   :  { %v619_v8 = vmax.f32 %v618_v7, 0.0 }
 0x250   :  { %v621_v11 = vadd.f32 1e-05, %v619_v8  ;;  %v1695_v8 = vpack.c.bf16 %v886_v5, %v885_v4 }
 0x252   :  { %1749 = vrsqrt.f32 %v621_v11 }
 0x25c   :  { %v1750_v20 = vpop.eup %1749 }
 0x25d   :  { %v623_v21 = vmul.f32 %v1750_v20, %v620_v17 }
 0x25f   :  { %v625_v23 = vmul.f32 %v623_v21, %v615_v61  ;;  %v631_v24 = vrot.slane %v623_v21, %v2108_v19 }
 0x261   :  { %v626_v25 = vsub.f32 %v624_v22, %v625_v23  ;;  %v633_v26 = vmul.f32 %v631_v24, %v2072_v6  ;;  %v634_v27 = vmul.f32 %v2066_v3, %v631_v24  ;;  %v635_v28 = vmul.f32 %v631_v24, %v2082_v18  ;;  %v661_v3 = vld [vmem:[#allocation8 + $0x10] sm:$0xff]  ;;  %v662_v6 = vld [vmem:[#allocation8 + $0x18] sm:$0xff] }
 0x262   :  { %v636_v29 = vmul.f32 %v2080_v16, %v631_v24  ;;  %v1671_v39 = vpack.c.bf16 %v662_v6, %v661_v3 }
 0x263   :  { %v641_v30 = vrot.slane %v626_v25, %v2108_v19 }
 0x265   :  { %v643_v31 = vadd.f32 %v641_v30, %v633_v26  ;;  %v644_v32 = vadd.f32 %v641_v30, %v634_v27  ;;  %v645_v33 = vadd.f32 %v641_v30, %v635_v28  ;;  %v646_v34 = vadd.f32 %v641_v30, %v636_v29 }
 0x267   :  { %v647_v35 = vmax.f32 %v643_v31, 0.0  ;;  %v648_v36 = vmax.f32 %v644_v32, 0.0  ;;  %v649_v37 = vmax.f32 %v645_v33, 0.0  ;;  %v650_v38 = vmax.f32 %v646_v34, 0.0 }
 0x269   :  { %651 = vst.msk [vmem:[#allocation2 + $0x8] sm:$0xff] %vm89_vm0, %v647_v35  ;;  %652 = vst.msk [vmem:[#allocation2 + $0x10] sm:$0xff] %vm89_vm0, %v648_v36 }
 0x26a   :  { %653 = vst.msk [vmem:[#allocation2 + $0x28] sm:$0xff] %vm89_vm0, %v649_v37  ;;  %654 = vst.msk [vmem:[#allocation2 + $0x30] sm:$0xff] %vm89_vm0, %v650_v38 }
 0x270   :  { %v667_v16 = vld [vmem:[#allocation2 + $0x8] sm:$0xff]  ;;  %v668_v18 = vld [vmem:[#allocation2 + $0x10] sm:$0xff] }
 0x271   :  { %1491 = vmatprep.mubr.msk.f32.mxu1 %vm89_vm0, %v667_v16  ;;  %v669_v42 = vld [vmem:[#allocation2 + $0x28] sm:$0xff]  ;;  %v670_v44 = vld [vmem:[#allocation2 + $0x30] sm:$0xff] }
 0x272   :  { %1492 = vmatmul.mubr.msk.f32.vlgmr.msra.gmra.mrb[4].mxu1 %vm89_vm0, %v668_v18  ;;  %v655_v47 = vld [vmem:[#allocation2 + $0x7] sm:$0xff]  ;;  %v658_v1 = vld [vmem:[#allocation2 + $0x2f] sm:$0xff] }
 0x273   :  { %1670 = vmatpush3.bf16.msra.mxu1 %v1667_v57  ;;  %1494 = vmatprep.mubr.msk.f32.mxu1 %vm89_vm0, %v669_v42  ;;  %v656_v57 = vld [vmem:[#allocation2 + $0xf] sm:$0xff]  ;;  %v657_v61 = vld [vmem:[#allocation2 + $0x27] sm:$0xff] }
 0x274   :  { %1672 = vmatprep.subr.bf16.mxu1 %v1671_v39  ;;  %v874_v7 = vld [vmem:[#allocation2 + $0x9] sm:$0xff]  ;;  %v875_v11 = vld [vmem:[#allocation2 + $0x11] sm:$0xff] }
 0x275   :  { %v876_v13 = vld [vmem:[#allocation2 + $0x29] sm:$0xff]  ;;  %v877_v14 = vld [vmem:[#allocation2 + $0x31] sm:$0xff] }
 0x276   :  { %1495 = vmatmul.mubr.msk.f32.gmra.mrb[6].mxu1 %vm89_vm0, %v670_v44 }
 0x277   :  { %1674 = vmatpush3.bf16.msra.mxu1 %v1671_v39  ;;  %1513 = vmatprep.mubr.msk.f32.mxu1 %vm89_vm0, %v655_v47 }
 0x278   :  { %1676 = vmatprep.subr.bf16.mxu1 %v1675_v43 }
 0x27b   :  { %1678 = vmatpush3.bf16.msra.mxu1 %v1675_v43 }
 0x27c   :  { %1680 = vmatprep.subr.bf16.mxu1 %v1679_v48 }
 0x27f   :  { %1682 = vmatpush3.bf16.msra.mxu1 %v1679_v48 }
 0x280   :  { %1684 = vmatprep.subr.bf16.mxu1 %v1683_v51 }
 0x282   :  { %1514 = vmatmul.mubr.msk.f32.vlgmr.msra.gmra.mrb[4].mxu1 %vm89_vm0, %v656_v57 }
 0x283   :  { %1516 = vmatprep.mubr.msk.f32.mxu1 %vm89_vm0, %v657_v61  ;;  %1686 = vmatpush3.bf16.msra.mxu1 %v1683_v51 }
 0x284   :  { %1688 = vmatprep.subr.bf16.mxu1 %v1687_v54 }
 0x286   :  { %1517 = vmatmul.mubr.msk.f32.gmra.mrb[6].mxu1 %vm89_vm0, %v658_v1 }
 0x287   :  { %1690 = vmatpush3.bf16.msra.mxu1 %v1687_v54  ;;  %1535 = vmatprep.mubr.msk.f32.mxu1 %vm89_vm0, %v874_v7 }
 0x288   :  { %1692 = vmatprep.subr.bf16.mxu1 %v1691_v63 }
 0x28b   :  { %1694 = vmatpush3.bf16.msra.mxu1 %v1691_v63 }
 0x28c   :  { %1696 = vmatprep.subr.bf16.mxu1 %v1695_v8 }
 0x28f   :  { %1698 = vmatpush3.bf16.msra.mxu1 %v1695_v8 }
 0x292   :  { %1536 = vmatmul.mubr.msk.f32.vlgmr.msra.gmra.mrb[4].mxu1 %vm89_vm0, %v875_v11 }
 0x293   :  { %1538 = vmatprep.mubr.msk.f32.mxu1 %vm89_vm0, %v876_v13 }
 0x296   :  { %1539 = vmatmul.mubr.msk.f32.gmra.mrb[6].mxu1 %vm89_vm0, %v877_v14 }
 0x365   :  { %v2135_v17 = vpop.f32.mrb[4].mxu1 }
 0x366   :  { %v989_v20 = vsel %vm89_vm0, %v2135_v17, 0.0  ;;  %v1083_v21 = vmul.f32 %v2135_v17, %v2135_v17  ;;  %v965_v22 = vpop.f32.mrb[5].mxu1 }
 0x367   :  { %v988_v23 = vsel %vm89_vm0, %v965_v22, 0.0  ;;  %v1082_v24 = vmul.f32 %v965_v22, %v965_v22 }
 0x368   :  { %v1087_v25 = vsel %vm89_vm0, %v1083_v21, 0.0  ;;  %v990_v26 = vadd.f32 %v989_v20, %v988_v23 }
 0x369   :  { %v1086_v27 = vsel %vm89_vm0, %v1082_v24, 0.0  ;;  %v1540_v28 = vpop.f32.mrb[6].mxu1 }
 0x36a   :  { %v1088_v29 = vadd.f32 %v1087_v25, %v1086_v27  ;;  %v975_v30 = vpop.f32.mrb[7].mxu1  ;;  %v1085_v31 = vmul.f32 %v1540_v28, %v1540_v28  ;;  %v993_v35 = vsel %vm89_vm0, %v1540_v28, 0.0 }
 0x36b   :  { %v991_v32 = vsel %vm89_vm0, %v975_v30, 0.0  ;;  %v1084_v33 = vmul.f32 %v975_v30, %v975_v30 }
 0x36c   :  { %v992_v34 = vadd.f32 %v991_v32, %v990_v26  ;;  %v1091_v3 = vsel %vm89_vm0, %v1085_v31, 0.0 }
 0x36d   :  { %v1089_v36 = vsel %vm89_vm0, %v1084_v33, 0.0 }
 0x36e   :  { %v994_v37 = vadd.f32 %v993_v35, %v992_v34  ;;  %v1090_v38 = vadd.f32 %v1089_v36, %v1088_v29 }
 0x370   :  { %v995_v6 = vrot.slane %v994_v37, 4  ;;  %v1092_v16 = vadd.f32 %v1091_v3, %v1090_v38 }
 0x372   :  { %v996_v18 = vadd.f32 %v995_v6, %v994_v37  ;;  %v1093_v41 = vrot.slane %v1092_v16, 4 }
 0x374   :  { %v997_v39 = vrot.slane %v996_v18, 2  ;;  %v1094_v44 = vadd.f32 %v1093_v41, %v1092_v16 }
 0x376   :  { %v998_v40 = vadd.f32 %v997_v39, %v996_v18  ;;  %v1095_v45 = vrot.slane %v1094_v44, 2 }
 0x378   :  { %v999_v42 = vrot.slane %v998_v40, 1  ;;  %v1096_v46 = vadd.f32 %v1095_v45, %v1094_v44 }
 0x37a   :  { %v1000_v43 = vadd.f32 %v999_v42, %v998_v40  ;;  %v1097_v47 = vrot.slane %v1096_v46, 1 }
 0x37c   :  { %1558 = vmatmul.mubr.msk.f32.vlgmr.msra.gmra.mrb[4].mxu0 %vm89_vm0, %v1000_v43  ;;  %v1098_v48 = vadd.f32 %v1097_v47, %v1096_v46 }
 0x37d   :  { %1713 = vmatpush3.bf16.msra.mxu0 %v2036_v55  ;;  %1576 = vmatprep.mubr.msk.f32.mxu0 %vm1879_vm1, %v1877_v0 }
 0x37e   :  { %1714 = vmatprep.subr.bf16.mxu0 %v1878_v56 }
 0x381   :  { %1716 = vmatpush3.bf16.msra.mxu0 %v2044_v59 }
 0x382   :  { %1717 = vmatprep.subr.bf16.mxu0 %v1878_v56 }
 0x385   :  { %1719 = vmatpush3.bf16.msra.mxu0 %v2050_v62 }
 0x386   :  { %1720 = vmatprep.subr.bf16.mxu0 %v1878_v56  ;;  %v1177_v56 = vld [vmem:[%s2196_s5] sm:$0x1]  ;;  %s1880_s5 = smov [#allocation11]  }
 0x387   :  { %s1221_s15 = sshll.u32 %s1880_s5, 4  ;;  %s1222_s15 = int_to_ptr.vmem [resolvable:$true] %s1221_s15 }
 0x388   :  { %s1841_s6 = scalar_lea.vmem %s1222_s15, 512  ;;  %p1846_p5 = scmp.lt.s32.totalorder %s1222_s15, %s1222_s15 }
 0x389   :  { %1722 = vmatpush3.bf16.msra.mxu0 %v2056_v2  ;;  %p1842_p4 = scmp.ne.s32.totalorder %s1222_s15, %s1841_s6  ;;  %p1847_p6 = scmp.lt.s32.totalorder %s1841_s6, %s1841_s6 }
 0x38b   :  { %p1848_p7 = por %p1847_p6, %p1846_p5 }
 0x38c   :  { %1577 = vmatmul.mubr.msk.f32.vlgmr.msra.gmra.mrb[6].mxu0 %vm89_vm0, %v1098_v48 }
 0x38d   :  { %p1849_p8 = pnand %p1848_p7, %p1842_p4 }
 0x44f   :  { %v1078_v55 = vpop.f32.mrb[4].mxu0 }
 0x450   :  { %v1559_v0 = vpop.f32.mrb[5].mxu0  ;;  %v1172_v49 = vmul.f32 0.001953125, %v1078_v55 }
 0x452   :  { %v1174_v51 = vmul.f32 %v1172_v49, %v1172_v49 }
 0x45f   :  { %v1168_v50 = vpop.f32.mrb[6].mxu0 }
 0x460   :  { %v1173_v52 = vmul.f32 0.001953125, %v1168_v50  ;;  %v1578_v59 = vpop.f32.mrb[7].mxu0 }
 0x462   :  { %v1175_v53 = vsub.f32 %v1173_v52, %v1174_v51 }
 0x464   :  { %v1176_v54 = vmax.f32 %v1175_v53, 0.0 }
 0x466   :  { %v1178_v57 = vadd.f32 1e-05, %v1176_v54 }
 0x468   :  { %1751 = vrsqrt.f32 %v1178_v57 }
 0x472   :  { %v1752_v62 = vpop.eup %1751 }
 0x473   :  { %v1180_v2 = vmul.f32 %v1752_v62, %v1177_v56 }
 0x475   :  { %v1182_v60 = vmul.f32 %v1180_v2, %v1172_v49  ;;  %v1188_v61 = vrot.slane %v1180_v2, %v2108_v19 }
 0x477   :  { %v1183_v63 = vsub.f32 %v1181_v58, %v1182_v60  ;;  %v1190_v1 = vmul.f32 %v1188_v61, %v965_v22  ;;  %v1191_v4 = vmul.f32 %v2135_v17, %v1188_v61  ;;  %v1192_v5 = vmul.f32 %v1188_v61, %v975_v30 }
 0x478   :  { %v1193_v7 = vmul.f32 %v1540_v28, %v1188_v61 }
 0x479   :  { %v1198_v8 = vrot.slane %v1183_v63, %v2108_v19 }
 0x47b   :  { %v1200_v11 = vadd.f32 %v1198_v8, %v1190_v1  ;;  %v1201_v13 = vadd.f32 %v1198_v8, %v1191_v4  ;;  %v1202_v14 = vadd.f32 %v1198_v8, %v1192_v5  ;;  %v1203_v20 = vadd.f32 %v1198_v8, %v1193_v7 }
 0x47d   :  { %v1204_v21 = vadd.f32 %v1200_v11, %v2008_v9  ;;  %v1205_v23 = vadd.f32 %v1201_v13, %v2012_v10  ;;  %v1206_v24 = vadd.f32 %v1202_v14, %v2016_v12  ;;  %v1207_v22 = vadd.f32 %v1203_v20, %v2020_v15 }
 0x47f   :  { %v1208_v25 = vmax.f32 %v1204_v21, 0.0  ;;  %v1209_v17 = vmax.f32 %v1205_v23, 0.0  ;;  %v1210_v26 = vmax.f32 %v1206_v24, 0.0  ;;  %v1211_v27 = vmax.f32 %v1207_v22, 0.0 }
 0x481   :  { %1212 = vst.msk [vmem:[#allocation11] sm:$0xff] %vm89_vm0, %v1208_v25  ;;  %1213 = vst.msk [vmem:[#allocation11 + $0x8] sm:$0xff] %vm89_vm0, %v1209_v17 }
 0x482   :  { %1214 = vst.msk [vmem:[#allocation11 + $0x10] sm:$0xff] %vm89_vm0, %v1210_v26  ;;  %1215 = vst.msk [vmem:[#allocation11 + $0x18] sm:$0xff] %vm89_vm0, %v1211_v27 }
 0x483   :  { %1852 = shalt.err (!%p1849_p8)
}
 0x484   :  { %s1853_s20 = scalar_lea.hbm %s2199_s8, 512 }
 0x485   :  { %p1854_p9 = scmp.ne.s32.totalorder %s2199_s8, %s1853_s20  ;;  %p1857_p10 = scmp.lt.u32.totalorder %s1853_s20, %s2199_s8 }
 0x487   :  { %p1859_p11 = pnand %p1857_p10, %p1854_p9 }
 0x489   :  { %1862 = shalt.err (!%p1859_p11)
}
 0x48a   :  { %1227 = dma.vmem_to_hbm [thread:$0]  %s1222_s15, 512, %s2199_s8, [#allocation5], %s1873_s17, %s1873_s17, %s1874_s18  }
 0x48b   :  { %1869 = dma.done.wait [#allocation5], 512  }
 0x48c   :  { %1870 = vsyncadd [#allocation5], 4294966784 }
 0x48d   :  { %1231 = vsyncpa [#allocation4], 1 }
 0x48e   :  { %1232 = vsyncpa [#allocation7], 1 }
 0x48f   :  { %1233 = vsyncpa [#allocation10], 1 }
 0x490   :  { %1234 = vsyncpa [#allocation5], 1 }

</bundles_post_ra>
